<compile_context>
chip_gen: v7x
topology: tpu7x:2x2x1
jax: 0.10.0
libtpu: 0.0.40
codegen_flags: <defaults>
</compile_context>

<pallas_src>
import jax
import jax.numpy as jnp
from jax.experimental import pallas as pl
from jax.experimental.pallas import tpu as pltpu


# ----------------------------------------------------------------------------
# Kernels: z = (shift + scale * x) [* mask]
# Forward:  scale = exp(logs),  shift = bias
# Reverse:  scale = exp(-logs), shift = -bias * exp(-logs)
# ----------------------------------------------------------------------------
def _affine_kernel(x_ref, scale_ref, shift_ref, z_ref):
    z_ref[...] = shift_ref[...] + scale_ref[...] * x_ref[...]


def _affine_mask_kernel(x_ref, mask_ref, scale_ref, shift_ref, z_ref):
    z_ref[...] = (shift_ref[...] + scale_ref[...] * x_ref[...]) * mask_ref[...]


def _affine_len_kernel(lens_ref, x_ref, scale_ref, shift_ref, z_ref):
    # Mask built in-kernel from SMEM-prefetched lengths; no HBM mask stream.
    b = pl.program_id(0)
    t = pl.program_id(1)
    t_tile = x_ref.shape[-1]
    pos = t * t_tile + jax.lax.broadcasted_iota(jnp.int32, x_ref.shape, dimension=2)
    mask = (pos < lens_ref[b]).astype(x_ref.dtype)
    z_ref[...] = (shift_ref[...] + scale_ref[...] * x_ref[...]) * mask


# ----------------------------------------------------------------------------
# Tile / VMEM budgeting
# ----------------------------------------------------------------------------
def _round_down(n, m):
    return (n // m) * m


def _vmem_capacity_bytes():
    try:
        return int(pltpu.get_tpu_info().vmem_capacity_bytes)
    except Exception:
        return 64 * 1024 * 1024  # conservative fallback (v7x per-TensorCore VMEM)


def _pick_time_tile(T, C, itemsize, streamed_rows, vmem_capacity, B):
    """Pick the T tile: ~2 MiB x blocks, VMEM-budgeted, divisor of T if possible."""
    # Target ~2 MiB per x block (>= 1024 lanes) so per-grid-step overhead is noise.
    target = max(1024, _round_down(2_000_000 // max(1, C * itemsize), 128))

    # All streamed blocks (x in, z out, optional mask) are double-buffered by
    # the BlockSpec pipeline; keep the total well inside VMEM on every chip.
    budget = min(int(0.45 * vmem_capacity), 48 * 1024 * 1024)
    vmem_cap_t = max(128, _round_down(budget // (2 * streamed_rows * itemsize), 128))

    cap = min(target, vmem_cap_t, 32768)

    # With B == 1, keep >= 2 grid steps along T so v7x's two TensorCores both
    # get work (irrelevant for v5e/v6e's single core).
    if B == 1 and 1024 < T <= cap:
        cap = min(cap, max(1024, _round_down((T + 1) // 2, 128)))

    if T <= cap:
        return T  # single full-extent block: lane-dense, no ragged tail

    # Largest 128-multiple tile that divides T -> every store is a full vst.
    k = cap // 128
    while k >= 1:
        t = k * 128
        if T % t == 0:
            return t
        k -= 1
    return max(128, _round_down(cap, 128))  # ragged tail (correct, slightly slower)


# ----------------------------------------------------------------------------
# Wrapper
# ----------------------------------------------------------------------------
def actnorm_forward(x, logs, bias, x_mask=None, x_lengths=None, reverse=False):
    """Pallas implementation of ActNorm.forward (initialized=True path).

    Args:
      x:         (B, C, T) array.
      logs:      (1, C, 1) parameter.
      bias:      (1, C, 1) parameter.
      x_mask:    optional (B, 1, T) mask (streamed from HBM). Defaults to ones.
      x_lengths: optional (B,) int lengths. Used only when x_mask is None; the
                 mask is then built in-kernel (no HBM mask stream).
      reverse:   static bool.

    Returns:
      (z, logdet): z.shape == x.shape; logdet is float32 (B,) when
      reverse=False and None when reverse=True.
    """
    # TODO(synk): data-dependent initialization (ddi / self.initialize) is a
    # one-time stateful parameter update in PyTorch; only the initialized
    # forward/reverse math is implemented here.
    B, C, T = x.shape
    dt = x.dtype
    itemsize = jnp.dtype(dt).itemsize

    # Precompute the affine params in float32 in the wrapper (one tiny XLA op);
    # the kernel never calls exp.
    logs_f32 = logs.astype(jnp.float32)
    bias_f32 = bias.astype(jnp.float32)
    if reverse:
        scale = jnp.exp(-logs_f32)
        shift = -bias_f32 * scale
    else:
        scale = jnp.exp(logs_f32)
        shift = bias_f32
    scale = scale.astype(dt)
    shift = shift.astype(dt)

    use_mask_stream = x_mask is not None
    use_lengths = (x_mask is None) and (x_lengths is not None)

    streamed_rows = 2 * C + (1 if use_mask_stream else 0)  # rows of T per step
    vmem_cap = _vmem_capacity_bytes()
    tT = _pick_time_tile(T, C, itemsize, streamed_rows, vmem_cap, B)
    grid = (B, pl.cdiv(T, tT))

    compiler_params = pltpu.CompilerParams(
        dimension_semantics=("parallel", "parallel"),
        vmem_limit_bytes=int(min(0.75 * vmem_cap, 64 * 1024 * 1024)),
    )
    out_shape = jax.ShapeDtypeStruct((B, C, T), dt)

    # TODO(synk): for very small C (< 8 for f32) the (C, tT) slab only fills
    # part of the 8 sublanes; a B*C-merged 2D layout would pack them densely.

    if use_lengths:
        lengths_i32 = x_lengths.astype(jnp.int32)
        x_spec = pl.BlockSpec((1, C, tT), lambda b, t, lens: (b, 0, t))
        p_spec = pl.BlockSpec((1, C, 1), lambda b, t, lens: (0, 0, 0))
        z_spec = pl.BlockSpec((1, C, tT), lambda b, t, lens: (b, 0, t))
        z = pl.pallas_call(
            _affine_len_kernel,
            out_shape=out_shape,
            grid_spec=pltpu.PrefetchScalarGridSpec(
                num_scalar_prefetch=1,
                grid=grid,
                in_specs=[x_spec, p_spec, p_spec],
                out_specs=z_spec,
            ),
            compiler_params=compiler_params,
        )(lengths_i32, x, scale, shift)
    elif use_mask_stream:
        mask = x_mask.astype(dt)
        x_spec = pl.BlockSpec((1, C, tT), lambda b, t: (b, 0, t))
        m_spec = pl.BlockSpec((1, 1, tT), lambda b, t: (b, 0, t))
        p_spec = pl.BlockSpec((1, C, 1), lambda b, t: (0, 0, 0))
        z_spec = pl.BlockSpec((1, C, tT), lambda b, t: (b, 0, t))
        z = pl.pallas_call(
            _affine_mask_kernel,
            out_shape=out_shape,
            grid=grid,
            in_specs=[x_spec, m_spec, p_spec, p_spec],
            out_specs=z_spec,
            compiler_params=compiler_params,
        )(x, mask, scale, shift)
    else:
        # No mask at all: no ones() materialized, no mask stream, no multiply.
        x_spec = pl.BlockSpec((1, C, tT), lambda b, t: (b, 0, t))
        p_spec = pl.BlockSpec((1, C, 1), lambda b, t: (0, 0, 0))
        z_spec = pl.BlockSpec((1, C, tT), lambda b, t: (b, 0, t))
        z = pl.pallas_call(
            _affine_kernel,
            out_shape=out_shape,
            grid=grid,
            in_specs=[x_spec, p_spec, p_spec],
            out_specs=z_spec,
            compiler_params=compiler_params,
        )(x, scale, shift)

    if reverse:
        return z, None

    # logdet = sum(logs) * x_len, computed in float32 in the wrapper (cheap
    # reduction; avoids a lane-width-1 output and in-kernel XLU reduces).
    if use_mask_stream:
        x_len = jnp.sum(x_mask.astype(jnp.float32), axis=(1, 2))
    elif use_lengths:
        x_len = x_lengths.astype(jnp.float32)
    else:
        x_len = jnp.full((B,), float(T), dtype=jnp.float32)
    logdet = jnp.sum(logs_f32) * x_len  # kept in float32 (parameter precision)
    return z, logdet


# ----------------------------------------------------------------------------
# Pure-JAX references + self-test
# ----------------------------------------------------------------------------
def _ref_forward(x, logs, bias, x_mask):
    z = (bias + jnp.exp(logs) * x) * x_mask
    logdet = jnp.sum(logs) * jnp.sum(x_mask, axis=(1, 2))
    return z, logdet


def _ref_reverse(x, logs, bias, x_mask):
    return (x - bias) * jnp.exp(-logs) * x_mask


if __name__ == "__main__":
    key = jax.random.PRNGKey(0)

    def run_case(B, C, T):
        k = jax.random.fold_in(key, B * 1_000_000 + C * 10_000 + T)
        kx, kl, kb = jax.random.split(k, 3)
        x = jax.random.normal(kx, (B, C, T), dtype=jnp.float32)
        # __init__ uses zeros; use small non-zero values so all paths are exercised.
        logs = 0.1 * jax.random.normal(kl, (1, C, 1), dtype=jnp.float32)
        bias = 0.1 * jax.random.normal(kb, (1, C, 1), dtype=jnp.float32)

        lengths = jnp.maximum(1, T - jnp.arange(B, dtype=jnp.int32) * (T // 3))
        x_mask = (jnp.arange(T)[None, None, :] < lengths[:, None, None]).astype(
            jnp.float32)

        z_ref, logdet_ref = _ref_forward(x, logs, bias, x_mask)

        # 1) Explicit mask stream (general path).
        z, logdet = actnorm_forward(x, logs, bias, x_mask=x_mask)
        jax.block_until_ready((z, logdet))
        assert jnp.allclose(z, z_ref, atol=1e-5, rtol=1e-5)
        assert jnp.allclose(logdet, logdet_ref, atol=1e-3, rtol=1e-5)

        # 2) Lengths fast path (mask built in-kernel from SMEM-prefetched lengths).
        z2, logdet2 = actnorm_forward(x, logs, bias, x_lengths=lengths)
        jax.block_until_ready((z2, logdet2))
        assert jnp.allclose(z2, z_ref, atol=1e-5, rtol=1e-5)
        assert jnp.allclose(logdet2, logdet_ref, atol=1e-3, rtol=1e-5)

        # 3) No mask at all (== ones mask, but no mask stream compiled).
        ones = jnp.ones_like(x_mask)
        z_ref3, logdet_ref3 = _ref_forward(x, logs, bias, ones)
        z3, logdet3 = actnorm_forward(x, logs, bias)
        jax.block_until_ready((z3, logdet3))
        assert jnp.allclose(z3, z_ref3, atol=1e-5, rtol=1e-5)
        assert jnp.allclose(logdet3, logdet_ref3, atol=1e-3, rtol=1e-5)

        # 4) Reverse matches the reference and inverts forward on the masked region.
        x_back, logdet_rev = actnorm_forward(z, logs, bias, x_mask=x_mask, reverse=True)
        jax.block_until_ready(x_back)
        assert logdet_rev is None
        assert jnp.allclose(x_back, _ref_reverse(z, logs, bias, x_mask),
                            atol=1e-5, rtol=1e-5)
        assert jnp.allclose(x_back, x * x_mask, atol=1e-5, rtol=1e-5)

    run_case(2, 4, 16)      # tiny: single full-extent block per batch element
    run_case(2, 8, 2048)    # full-T block per batch element, grid (2, 1)
    run_case(1, 16, 4096)   # B == 1: tile split along T so the grid stays >= 2

    print("KERNEL_OK")
</pallas_src>

<mosaic_0001>
module attributes {stable_mosaic.version = 11 : i64} {
  func.func @_affine_mask_kernel(%arg0: i32, %arg1: i32, %arg2: memref<1x4x16xf32, #tpu.memory_space<vmem>>, %arg3: memref<1x1x16xf32, #tpu.memory_space<vmem>>, %arg4: memref<1x4x1xf32, #tpu.memory_space<vmem>>, %arg5: memref<1x4x1xf32, #tpu.memory_space<vmem>>, %arg6: memref<1x4x16xf32, #tpu.memory_space<vmem>>) attributes {dimension_semantics = [#tpu.dimension_semantics<parallel>, #tpu.dimension_semantics<parallel>], iteration_bounds = array<i64: 2, 1>, scalar_prefetch = 0 : i64, scratch_operands = 0 : i64, tpu.core_type = #tpu.core_type<tc>, window_params = [{transform_indices = @transform_0, window_bounds = array<i64: 1, 4, 16>}, {transform_indices = @transform_1, window_bounds = array<i64: 1, 1, 16>}, {pipeline_mode = #tpu.pipeline_mode<synchronous>, transform_indices = @transform_2, window_bounds = array<i64: 1, 4, 1>}, {pipeline_mode = #tpu.pipeline_mode<synchronous>, transform_indices = @transform_3, window_bounds = array<i64: 1, 4, 1>}, {transform_indices = @transform_4, window_bounds = array<i64: 1, 4, 16>}]} {
    %c0 = arith.constant 0 : index
    %c0_0 = arith.constant 0 : index
    %c0_1 = arith.constant 0 : index
    %0 = vector.load %arg5[%c0, %c0_0, %c0_1] : memref<1x4x1xf32, #tpu.memory_space<vmem>>, vector<1x4x1xf32>
    %c0_2 = arith.constant 0 : index
    %c0_3 = arith.constant 0 : index
    %c0_4 = arith.constant 0 : index
    %1 = vector.load %arg4[%c0_2, %c0_3, %c0_4] : memref<1x4x1xf32, #tpu.memory_space<vmem>>, vector<1x4x1xf32>
    %c0_5 = arith.constant 0 : index
    %c0_6 = arith.constant 0 : index
    %c0_7 = arith.constant 0 : index
    %2 = vector.load %arg2[%c0_5, %c0_6, %c0_7] : memref<1x4x16xf32, #tpu.memory_space<vmem>>, vector<1x4x16xf32>
    %3 = vector.broadcast %1 : vector<1x4x1xf32> to vector<1x4x16xf32>
    %4 = arith.mulf %3, %2 : vector<1x4x16xf32>
    %5 = vector.broadcast %0 : vector<1x4x1xf32> to vector<1x4x16xf32>
    %6 = arith.addf %5, %4 : vector<1x4x16xf32>
    %c0_8 = arith.constant 0 : index
    %c0_9 = arith.constant 0 : index
    %c0_10 = arith.constant 0 : index
    %7 = vector.load %arg3[%c0_8, %c0_9, %c0_10] : memref<1x1x16xf32, #tpu.memory_space<vmem>>, vector<1x1x16xf32>
    %8 = vector.broadcast %7 : vector<1x1x16xf32> to vector<1x4x16xf32>
    %9 = arith.mulf %6, %8 : vector<1x4x16xf32>
    %c0_11 = arith.constant 0 : index
    %c0_12 = arith.constant 0 : index
    %c0_13 = arith.constant 0 : index
    %10 = vector.load %arg6[%c0_11, %c0_12, %c0_13] : memref<1x4x16xf32, #tpu.memory_space<vmem>>, vector<1x4x16xf32>
    tpu.vector_store %arg6[%c0_11, %c0_12, %c0_13], %9 {strides = array<i32>} : memref<1x4x16xf32, #tpu.memory_space<vmem>>, vector<1x4x16xf32>,
    return
  }
  func.func @transform_0(%arg0: i32, %arg1: i32) -> (i32, i32, i32) {
    %c0_i32 = arith.constant 0 : i32
    %c0_i32_0 = arith.constant 0 : i32
    return %arg0, %c0_i32, %arg1 : i32, i32, i32
  }
  func.func @transform_1(%arg0: i32, %arg1: i32) -> (i32, i32, i32) {
    %c0_i32 = arith.constant 0 : i32
    %c0_i32_0 = arith.constant 0 : i32
    return %arg0, %c0_i32, %arg1 : i32, i32, i32
  }
  func.func @transform_2(%arg0: i32, %arg1: i32) -> (i32, i32, i32) {
    %c0_i32 = arith.constant 0 : i32
    %c0_i32_0 = arith.constant 0 : i32
    %c0_i32_1 = arith.constant 0 : i32
    %c0_i32_2 = arith.constant 0 : i32
    return %c0_i32, %c0_i32_0, %c0_i32_1 : i32, i32, i32
  }
  func.func @transform_3(%arg0: i32, %arg1: i32) -> (i32, i32, i32) {
    %c0_i32 = arith.constant 0 : i32
    %c0_i32_0 = arith.constant 0 : i32
    %c0_i32_1 = arith.constant 0 : i32
    %c0_i32_2 = arith.constant 0 : i32
    return %c0_i32, %c0_i32_0, %c0_i32_1 : i32, i32, i32
  }
  func.func @transform_4(%arg0: i32, %arg1: i32) -> (i32, i32, i32) {
    %c0_i32 = arith.constant 0 : i32
    %c0_i32_0 = arith.constant 0 : i32
    return %arg0, %c0_i32, %arg1 : i32, i32, i32
  }
}

</mosaic_0001>

<bundles_post_ra>
// kernel: tpu_custom_call.1
= control target key start
LH: loop header
LB: loop body
LE: loop exit
PB: predicated region body
PF: predicated region fallthrough
CT: control target
= control target key end

     0   :  { %9 = vsyncpa [#allocation3], 0  ;;  %s663_s0 = inlined_call_operand.vmem [shape: f32[2,4,16], index: 0, kind: input, shape index: {}]   ;;  %s664_s1 = inlined_call_operand.vmem [shape: f32[2,1,16], index: 1, kind: input, shape index: {}]   ;;  %s665_s2 = inlined_call_operand.vmem [shape: f32[1,4,1], index: 2, kind: input, shape index: {}]   ;;  %s666_s3 = inlined_call_operand.vmem [shape: f32[1,4,1], index: 3, kind: input, shape index: {}]   ;;  %s667_s4 = inlined_call_operand.hbm [shape: f32[2,4,16], index: 4, kind: output, shape index: {}]  }
   0x1   :  { %11 = vsyncpa [#allocation3 + $0x1], 0  ;;  %s542_s15 = smov 0   ;;  %s544_s16 = smov 0  }
   0x2   :  { %s546_s17 = smov 0   ;;  %s548_s18 = smov 0  }
   0x3   :  { %s550_s19 = smov 0   ;;  %s552_s20 = smov 0  }
   0x4 LB: > { %s366_s21 = sadd.s32 4294967295, %s513_s20   ;;  %s367_s22 = sadd.s32 4294967294, %s513_s20   ;;  %s513_s20 = sphi %s552_s20, %s17_s20   ;;  %s509_s19 = sphi %s550_s19, %s674_s19   ;;  %s505_s18 = sphi %s548_s18, %s673_s18   ;;  %s501_s17 = sphi %s546_s17, %s672_s17   ;;  %s497_s16 = sphi %s544_s16, %s671_s16   ;;  %s493_s15 = sphi %s542_s15, %s670_s15  }
   0x5   : > { %s29_s23 = sadd.s32 1, %s509_s19  ;;  %s136_s24 = sadd.s32 1, %s501_s17 }
   0x6   : > { %p31_p0 = scmp.ge.s32.totalorder %s29_s23, 2  ;;  %p146_p1 = scmp.ne.s32.totalorder %s501_s17, %s497_s16 }
   0x7   : > { %p147_p2 = scmp.eq.s32.totalorder %s366_s21, 1  ;;  %p152_p3 = scmp.ne.s32.totalorder %s497_s16, %s493_s15 }
   0x8   : > { %s676_s23 = smov (%p31_p0, %s29_s23), 0  ;;  %p153_p5 = scmp.eq.s32.totalorder %s367_s22, 1 }
   0x9   : > { %p582_p4 = por %p147_p2, %p146_p1  ;;  %s131_s26 = ssub.s32 %s509_s19, %s676_s23 }
   0xa   : > { %p370_p6 = scmp.ge.s32.totalorder %s513_s20, 1  ;;  %p134_p7 = scmp.eq.s32.totalorder %s131_s26, 0 }
   0xb   : > { %p589_p8 = por %p153_p5, %p152_p3  ;;  %p196_p9 = scmp.lt.s32.totalorder %s513_s20, 3 }
   0xc   : > { %s595_s28 = scalar_select %p134_p7, %s501_s17, %s136_s24  }
   0xd   : > { %p197_p10 = pnand %p370_p6, %p196_p9 }
   0xe   : > { %v244_v0 = vld [vmem:[%s665_s2] sm:$0xf] (!%p197_p10)  ;;  %v515_v1 = vmov (!%p197_p10), 0   ;;  %p230_p11 = scmp.lt.s32.totalorder (!%p197_p10), %s505_s18, 1  ;;  %s227_s9 = sand.u32 (!%p197_p10), 1, %s497_s16   ;;  %vm266_vm0 = vcmask (!%p197_p10), 125952  }
   0xf   : > { %200 = sbr.rel (%p197_p10) target bundleno = 166 (0xa6), region = 36  ;;  %434 = vset.pattern.permute.xlu0 (!%p197_p10), %v515_v1  ;;  %v243_v2 = vld [vmem:[%s666_s3] sm:$0xf] (!%p197_p10)  ;;  %s371_s13 = sshll.u32 (!%p197_p10), %s227_s9, 2 }
  0x10   : > { %248 = vperm.xlu0 (!%p197_p10), %434, %v244_v0   ;;  %s375_s24 = sshll.u32 (!%p197_p10), %s505_s18, 6  ;;  %s229_s26 = scalar_lea.vmem (!%p197_p10), [#allocation2], %s371_s13 }
  0x11   : > { %s283_s29 = sshll.u32 (!%p197_p10), %s229_s26, 4  ;;  %s616_s6 = scalar_lea.hbm (!%p197_p10), %s667_s4, %s375_s24  ;;  %s618_s29 = int_to_ptr.vmem [resolvable:$true] %s283_s29 }
  0x14   : > { %254 = vperm.xlu0 (!%p197_p10), %434, %v243_v2  }
  0x16   : > { %s231_s7 = scalar_select %p230_p11, %s505_s18, 1 }
  0x17   : > { %s516_s18 = smov [#allocation2]  }
  0x18   : > { %s372_s8 = sshll.u32 %s231_s7, 2  ;;  %s242_s22 = scalar_lea.vmem %s664_s1, %s231_s7 }
  0x19   : > { %s236_s12 = scalar_lea.vmem %s663_s0, %s372_s8  ;;  %v373_v7 = vld [vmem:[%s242_s22] ss:$0 sm:$0xff]  ;;  %s269_s7 = scalar_lea.sflag [#allocation3], %s227_s9 }
  0x1a   : > { %v245_v4 = vld [vmem:[%s236_s12] sm:$0xf]  ;;  %s435_s8 = scalar_lea.vmem %s618_s29, 64  ;;  %s439_s10 = sshll.u32 %s516_s18, 4  ;;  %s440_s10 = int_to_ptr.vmem [resolvable:$false] %s439_s10 }
  0x1b   : > { %p436_p12 = scmp.ne.s32.totalorder %s618_s29, %s435_s8  ;;  %s441_s11 = scalar_lea.vmem %s440_s10, 128 }
  0x1c   : > { %p442_p1 = scmp.lt.s32.totalorder %s618_s29, %s440_s10  ;;  %p443_p2 = scmp.lt.s32.totalorder %s441_s11, %s435_s8 }
  0x1d   : > { %p437_p13 = pnand %p436_p12, %p582_p4 }
  0x1e   : > { %p444_p3 = por %p443_p2, %p442_p1 }
  0x1f   : > { %p438_p0 = pneg %p437_p13 }
  0x21   : > { %p445_p5 = pnand %p444_p3, %p438_p0 }
  0x8f   : > { %v249_v3 = vpop.permute.xlu0 %248 }
  0x90   : > { %v251_v5 = vmul.f32 %v249_v3, %v245_v4 }
  0x93   : > { %v255_v6 = vpop.permute.xlu0 %254 }
  0x94   : > { %v257_v8 = vadd.f32 %v255_v6, %v251_v5 }
  0x96   : > { %v265_v9 = vmul.f32 %v373_v7, %v257_v8 }
  0x98   : > { %267 = vst.msk [vmem:[%s229_s26] sm:$0xf] %vm266_vm0, %v265_v9 }
  0x99   : > { %448 = shalt.err (!%p445_p5)
}
  0x9a   : > { %s449_s9 = scalar_lea.hbm %s616_s6, 64  ;;  %s453_s14 = scalar_lea.hbm %s667_s4, 128 }
  0x9b   : > { %p450_p6 = scmp.ne.s32.totalorder %s616_s6, %s449_s9  ;;  %p454_p10 = scmp.lt.u32.totalorder %s616_s6, %s667_s4 }
  0x9c   : > { %p455_p11 = scmp.lt.u32.totalorder %s453_s14, %s449_s9  ;;  %p457_p13 = scmp.lt.u32.totalorder %s449_s9, %s616_s6 }
  0x9d   : > { %p451_p7 = pnand %p450_p6, %p582_p4 }
  0x9e   : > { %p456_p12 = por %p455_p11, %p454_p10 }
  0x9f   : > { %p452_p9 = pneg %p451_p7 }
  0xa0   : > { %p458_p0 = por %p457_p13, %p456_p12 }
  0xa2   : > { %p459_p1 = pnand %p458_p0, %p452_p9 }
  0xa4   : > { %462 = shalt.err (!%p459_p1)
}
  0xa5   : > { %378 = dma.vmem_to_hbm [thread:$0]  (%p582_p4), %s618_s29, 64, %s616_s6, %s269_s7  }
  0xa6 PF: > { %p384_p2 = scmp.ge.s32.totalorder %s513_s20, 2  ;;  %s295_s24 = sand.u32 1, %s493_s15  }
  0xa7   : > { %s296_s26 = scalar_lea.sflag [#allocation3], %s295_s24 }
  0xa8   : > { %p381_p3 = pnand %p384_p2, %p589_p8 }
  0xaa   : > { %488 = dma.done.wait (!%p381_p3), %s296_s26, 64  }
  0xab   : > { %490 = vsyncadd (!%p381_p3), %s296_s26, 4294967232  ;;  %s17_s20 = sadd.s32 1, %s513_s20   ;;  %s670_s15 = smov %s497_s16 }
  0xac   : > { %p14_p5 = scmp.ge.s32.totalorder %s17_s20, 4   ;;  %s671_s16 = smov %s501_s17 }
  0xad   : > { %s672_s17 = smov %s595_s28  ;;  %s673_s18 = smov %s509_s19 }
  0xae   : > { %s674_s19 = smov %s676_s23  ;;  %16 = sbr.rel (!%p14_p5) target bundleno = 4 (0x4), region = 74 }
  0xb5   :  { %301 = vsyncpa [#allocation3], 1 }
  0xb6   :  { %303 = vsyncpa [#allocation3 + $0x1], 1 }

</bundles_post_ra>
